<compile_context>
chip_gen: v7x
topology: tpu7x:2x2x1
jax: 0.10.0
libtpu: 0.0.40
codegen_flags: <defaults>
</compile_context>

<pallas_src>
import jax
import jax.numpy as jnp
from jax.experimental import pallas as pl
from jax.experimental.pallas import tpu as pltpu


DEFAULT_TM = 512    # rows of the flattened (bs*ln, fs) input per MXU feed
DEFAULT_TN = 512    # output-feature lanes per tile (multiple of 128)
DEFAULT_TK = 1024   # contraction block; fs <= DEFAULT_TK -> single-block path


def _round_up(x: int, m: int) -> int:
    return (x + m - 1) // m * m


def _pick_tile(dim_pad: int, t_max: int, align: int = 128) -> int:
    """Largest multiple of `align` that divides `dim_pad` and is <= t_max."""
    best = align
    q = dim_pad // align
    for d in range(1, q + 1):
        if q % d == 0 and d * align <= t_max:
            best = d * align
    return best


# ----------------------------- kernels ------------------------------------


def _linear_kernel(x_ref, w_ref, b_ref, o_ref):
    """Single-K-block path: out = x @ w + b, no accumulator / no pl.when."""
    x = x_ref[...].astype(jnp.bfloat16)            # VPU cast; MXU runs bf16xbf16 -> f32
    acc = jnp.dot(x, w_ref[...], preferred_element_type=jnp.float32)
    o_ref[...] = (acc + b_ref[...]).astype(o_ref.dtype)


def _linear_kernel_ksplit(x_ref, w_ref, b_ref, o_ref):
    """K-split path: accumulate directly into the f32 output block.

    The output block index is constant across the k axis, so it stays
    resident in VMEM; no separate scratch accumulator is needed.
    """
    k = pl.program_id(2)

    @pl.when(k == 0)
    def _():
        o_ref[...] = jnp.zeros_like(o_ref)

    x = x_ref[...].astype(jnp.bfloat16)
    o_ref[...] += jnp.dot(x, w_ref[...], preferred_element_type=jnp.float32)

    @pl.when(k == pl.num_programs(2) - 1)
    def _():
        o_ref[...] += b_ref[...]


# ----------------------------- wrappers ------------------------------------


def prepare_mlp_params(weight, bias, *, tk=DEFAULT_TK, param_dtype=jnp.bfloat16):
    """One-time transform of PyTorch nn.Linear params into the kernel layout.

    weight: (out, fs) f32  ->  (K_pad, N_pad) `param_dtype` in (K, N) layout
    bias:   (out,)    f32  ->  (1, N_pad) f32
    Returns (w_kn, bias2d, out_features).  Do this once per model, not per call.
    """
    out_size, fs = weight.shape
    n_pad = _round_up(out_size, 128)                     # lane-dense output width
    k_pad = fs if fs <= tk else _round_up(fs, 128)       # only pad K when it will be split
    w_kn = weight.T.astype(param_dtype)                  # (fs, out): plain TMxTK @ TKxTN dot
    w_kn = jnp.pad(w_kn, ((0, k_pad - fs), (0, n_pad - out_size)))
    b2d = jnp.pad(bias.astype(jnp.float32), (0, n_pad - out_size)).reshape(1, n_pad)
    return w_kn, b2d, out_size


def mlp_forward_prepared(x, w_kn, bias2d, out_features,
                         *, tm=DEFAULT_TM, tn=DEFAULT_TN, tk=DEFAULT_TK):
    """Pallas equivalent of MLP.forward with pre-prepared parameters.

    x:        (bs, ln, fs) float32
    w_kn:     (K_pad, N_pad) bf16 weight from prepare_mlp_params
    bias2d:   (1, N_pad) float32
    returns   (bs, ln, out_features) float32
    """
    bs, ln, fs = x.shape
    M, K = bs * ln, fs
    K_pad, N_pad = w_kn.shape
    N = out_features

    x2d = x.reshape(M, K)

    # ---- tile selection --------------------------------------------------
    # M: full-dim block when it fits (no ragged edge, no padding copy of x);
    # larger M uses tm rows and Pallas clips the ragged last block.
    tm_eff = M if M <= tm else tm
    tn_eff = _pick_tile(N_pad, tn)               # lane-dense, exactly divides N_pad
    grid_m = pl.cdiv(M, tm_eff)
    grid_n = N_pad // tn_eff

    single_k = K_pad <= tk
    if single_k:
        # K fits in one tile: no K grid axis, no accumulator; the x panel's
        # block index (i, 0) is constant across the j sweep -> stays resident.
        tk_eff = K_pad                           # == K, full-dim block
        grid = (grid_m, grid_n)
        kernel = _linear_kernel
        in_specs = [
            pl.BlockSpec((tm_eff, tk_eff), lambda i, j: (i, 0)),   # x panel
            pl.BlockSpec((tk_eff, tn_eff), lambda i, j: (0, j)),   # W (K, N)
            pl.BlockSpec((1, tn_eff), lambda i, j: (0, j)),        # bias
        ]
        out_specs = pl.BlockSpec((tm_eff, tn_eff), lambda i, j: (i, j))
        dims = ("parallel", "parallel")
    else:
        # K split: the contraction dim must be zero padded (garbage K would
        # corrupt valid outputs), so pad x's K here (only case that copies x).
        tk_eff = _pick_tile(K_pad, tk)
        if K_pad != K:
            x2d = jnp.pad(x2d, ((0, 0), (0, K_pad - K)))
        grid = (grid_m, grid_n, K_pad // tk_eff)
        kernel = _linear_kernel_ksplit
        in_specs = [
            pl.BlockSpec((tm_eff, tk_eff), lambda i, j, k: (i, k)),
            pl.BlockSpec((tk_eff, tn_eff), lambda i, j, k: (k, j)),
            pl.BlockSpec((1, tn_eff), lambda i, j, k: (0, j)),
        ]
        out_specs = pl.BlockSpec((tm_eff, tn_eff), lambda i, j, k: (i, j))
        dims = ("parallel", "parallel", "arbitrary")

    # ---- advisory cost: account for actual re-streamed traffic ------------
    x_bytes = (M * K_pad * 4) * (1 if single_k else grid_n)
    w_bytes = (K_pad * N_pad * 2) * grid_m          # bf16 weight, re-read per M tile
    o_bytes = M * N_pad * 4
    cost = pl.CostEstimate(
        flops=2 * M * K_pad * N_pad,
        transcendentals=0,
        bytes_accessed=int(x_bytes + w_bytes + o_bytes + N_pad * 4),
    )

    out2d = pl.pallas_call(
        kernel,
        out_shape=jax.ShapeDtypeStruct((M, N_pad), jnp.float32),
        grid_spec=pltpu.PrefetchScalarGridSpec(
            num_scalar_prefetch=0,
            grid=grid,
            in_specs=in_specs,
            out_specs=out_specs,
        ),
        compiler_params=pltpu.CompilerParams(dimension_semantics=dims),
        cost_estimate=cost,
    )(x2d, w_kn, bias2d)

    if N_pad != N:
        out2d = out2d[:, :N]
    return out2d.reshape(bs, ln, N)


def mlp_forward(x, weight, bias, *, tm=DEFAULT_TM, tn=DEFAULT_TN, tk=DEFAULT_TK):
    """Convenience wrapper taking PyTorch-layout params.

    In real use call prepare_mlp_params once and reuse the prepared params
    across forward calls (the weight transpose/pad/cast is per-model, not
    per-batch work).
    """
    w_kn, b2d, n = prepare_mlp_params(weight, bias, tk=tk)
    return mlp_forward_prepared(x, w_kn, b2d, n, tm=tm, tn=tn, tk=tk)


def init_linear_params(key, input_size, output_size):
    """Deterministic init matching PyTorch nn.Linear default (U(-k, k), k=1/sqrt(fan_in))."""
    k = 1.0 / jnp.sqrt(jnp.float32(input_size))
    kw, kb = jax.random.split(key)
    weight = jax.random.uniform(kw, (output_size, input_size),
                                dtype=jnp.float32, minval=-k, maxval=k)
    bias = jax.random.uniform(kb, (output_size,),
                              dtype=jnp.float32, minval=-k, maxval=k)
    return weight, bias


if __name__ == "__main__":
    def reference(x, weight, bias):
        bs, ln, fs = x.shape
        return (x.reshape(-1, fs) @ weight.T + bias).reshape(bs, ln, -1)

    def reference_bf16(x, weight, bias):
        # Same MXU precision as the kernel: bf16 operands, f32 accumulate, f32 bias.
        bs, ln, fs = x.shape
        xb = x.reshape(-1, fs).astype(jnp.bfloat16).astype(jnp.float32)
        wb = weight.astype(jnp.bfloat16).astype(jnp.float32)
        return (xb @ wb.T + bias).reshape(bs, ln, -1)

    # --- test 1: small shapes matching the module's forward (bs, ln, fs) ---
    bs, ln, fs, out_size = 2, 8, 32, 16
    key = jax.random.PRNGKey(0)
    kx, kp = jax.random.split(key)
    x = jax.random.normal(kx, (bs, ln, fs), dtype=jnp.float32)
    weight, bias = init_linear_params(kp, fs, out_size)

    y = jax.block_until_ready(mlp_forward(x, weight, bias))
    assert y.shape == (bs, ln, out_size)
    assert jnp.allclose(y, reference_bf16(x, weight, bias), atol=1e-4, rtol=1e-4)
    assert jnp.allclose(y, reference(x, weight, bias), atol=3e-2, rtol=3e-2)

    # --- test 2: non-divisible M/N, K as a single full-dim block -----------
    bs2, ln2, fs2, out2 = 3, 37, 200, 300
    k2x, k2p = jax.random.split(jax.random.PRNGKey(1))
    x2 = jax.random.normal(k2x, (bs2, ln2, fs2), dtype=jnp.float32)
    w2, b2 = init_linear_params(k2p, fs2, out2)
    w2_kn, b2_2d, n2 = prepare_mlp_params(w2, b2)        # one-time param prep
    y2 = jax.block_until_ready(mlp_forward_prepared(x2, w2_kn, b2_2d, n2))
    assert y2.shape == (bs2, ln2, out2)
    assert jnp.allclose(y2, reference_bf16(x2, w2, b2), atol=1e-4, rtol=1e-4)
    assert jnp.allclose(y2, reference(x2, w2, b2), atol=3e-2, rtol=3e-2)

    # --- test 3: K > tk exercises the K-split / accumulate-into-o_ref path --
    bs3, ln3, fs3, out3 = 2, 5, 1500, 130
    k3x, k3p = jax.random.split(jax.random.PRNGKey(2))
    x3 = jax.random.normal(k3x, (bs3, ln3, fs3), dtype=jnp.float32)
    w3, b3 = init_linear_params(k3p, fs3, out3)
    w3_kn, b3_2d, n3 = prepare_mlp_params(w3, b3)
    y3 = jax.block_until_ready(mlp_forward_prepared(x3, w3_kn, b3_2d, n3))
    assert y3.shape == (bs3, ln3, out3)
    assert jnp.allclose(y3, reference_bf16(x3, w3, b3), atol=1e-4, rtol=1e-4)
    assert jnp.allclose(y3, reference(x3, w3, b3), atol=5e-2, rtol=5e-2)

    print("KERNEL_OK")
</pallas_src>

<mosaic_0001>
module attributes {stable_mosaic.version = 11 : i64} {
  func.func @_linear_kernel(%arg0: i32, %arg1: i32, %arg2: memref<16x32xf32, #tpu.memory_space<vmem>>, %arg3: memref<32x128xbf16, #tpu.memory_space<vmem>>, %arg4: memref<1x128xf32, #tpu.memory_space<vmem>>, %arg5: memref<16x128xf32, #tpu.memory_space<vmem>>) attributes {dimension_semantics = [#tpu.dimension_semantics<parallel>, #tpu.dimension_semantics<parallel>], iteration_bounds = array<i64: 1, 1>, scalar_prefetch = 0 : i64, scratch_operands = 0 : i64, tpu.core_type = #tpu.core_type<tc>, window_params = [{transform_indices = @transform_0, window_bounds = array<i64: 16, 32>}, {transform_indices = @transform_1, window_bounds = array<i64: 32, 128>}, {transform_indices = @transform_2, window_bounds = array<i64: 1, 128>}, {transform_indices = @transform_3, window_bounds = array<i64: 16, 128>}]} {
    %c0 = arith.constant 0 : index
    %c0_0 = arith.constant 0 : index
    %0 = vector.load %arg2[%c0, %c0_0] : memref<16x32xf32, #tpu.memory_space<vmem>>, vector<16x32xf32>
    %1 = arith.truncf %0 : vector<16x32xf32> to vector<16x32xbf16>
    %c0_1 = arith.constant 0 : index
    %c0_2 = arith.constant 0 : index
    %2 = vector.load %arg3[%c0_1, %c0_2] : memref<32x128xbf16, #tpu.memory_space<vmem>>, vector<32x128xbf16>
    %cst = arith.constant dense<0.000000e+00> : vector<16x128xf32>
    %3 = tpu.matmul %1, %2, %cst {dimension_numbers = #tpu.dot_dimension_numbers<[1], [0], [0], [1], [0, 0, 1, 1], [], []>} : vector<16x32xbf16>, vector<32x128xbf16>, vector<16x128xf32> -> vector<16x128xf32>
    %c0_3 = arith.constant 0 : index
    %c0_4 = arith.constant 0 : index
    %4 = vector.load %arg4[%c0_3, %c0_4] : memref<1x128xf32, #tpu.memory_space<vmem>>, vector<1x128xf32>
    %5 = vector.broadcast %4 : vector<1x128xf32> to vector<16x128xf32>
    %6 = arith.addf %3, %5 : vector<16x128xf32>
    %c0_5 = arith.constant 0 : index
    %c0_6 = arith.constant 0 : index
    %7 = vector.load %arg5[%c0_5, %c0_6] : memref<16x128xf32, #tpu.memory_space<vmem>>, vector<16x128xf32>
    tpu.vector_store %arg5[%c0_5, %c0_6], %6 {strides = array<i32>} : memref<16x128xf32, #tpu.memory_space<vmem>>, vector<16x128xf32>,
    return
  }
  func.func @transform_0(%arg0: i32, %arg1: i32) -> (i32, i32) {
    %c0_i32 = arith.constant 0 : i32
    %c0_i32_0 = arith.constant 0 : i32
    return %arg0, %c0_i32 : i32, i32
  }
  func.func @transform_1(%arg0: i32, %arg1: i32) -> (i32, i32) {
    %c0_i32 = arith.constant 0 : i32
    %c0_i32_0 = arith.constant 0 : i32
    return %c0_i32, %arg1 : i32, i32
  }
  func.func @transform_2(%arg0: i32, %arg1: i32) -> (i32, i32) {
    %c0_i32 = arith.constant 0 : i32
    %c0_i32_0 = arith.constant 0 : i32
    return %c0_i32, %arg1 : i32, i32
  }
  func.func @transform_3(%arg0: i32, %arg1: i32) -> (i32, i32) {
    %c0_i32 = arith.constant 0 : i32
    return %arg0, %arg1 : i32, i32
  }
}

</mosaic_0001>

<bundles_post_ra>
// kernel: tpu_custom_call.1
= control target key start
LH: loop header
LB: loop body
LE: loop exit
PB: predicated region body
PF: predicated region fallthrough
CT: control target
= control target key end

     0   :  { %8 = vsyncpa [#allocation3], 0  ;;  %s307_s0 = inlined_call_operand.hbm [shape: f32[16,32], index: 0, kind: input, shape index: {}]   ;;  %s308_s1 = inlined_call_operand.hbm [shape: bf16[32,128], index: 1, kind: input, shape index: {}]   ;;  %s309_s2 = inlined_call_operand.vmem [shape: f32[1,128], index: 2, kind: input, shape index: {}]   ;;  %s310_s3 = inlined_call_operand.hbm [shape: f32[16,128], index: 3, kind: output, shape index: {}]  }
   0x1   :  { %9 = vsyncpa [#allocation6], 0 }
   0x2   :  { %10 = vsyncpa [#allocation4], 0  ;;  %s233_s12 = smov [#allocation2]   ;;  %s161_s16 = scalar_lea.hbm %s307_s0, 256 }
   0x3   :  { %s16_s13 = sshll.u32 %s233_s12, 4  ;;  %p162_p0 = scmp.ne.s32.totalorder %s307_s0, %s161_s16  ;;  %s17_s13 = int_to_ptr.vmem [resolvable:$true] %s16_s13 }
   0x4   :  { %p165_p1 = scmp.lt.u32.totalorder %s161_s16, %s307_s0 }
   0x6   :  { %p167_p2 = pnand %p165_p1, %p162_p0 }
   0x8   :  { %170 = shalt.err (!%p167_p2)
}
   0x9   :  { %s171_s21 = scalar_lea.vmem %s17_s13, 256  ;;  %p176_p4 = scmp.lt.s32.totalorder %s17_s13, %s17_s13 }
   0xa   :  { %p172_p3 = scmp.ne.s32.totalorder %s17_s13, %s171_s21  ;;  %p177_p5 = scmp.lt.s32.totalorder %s171_s21, %s171_s21 }
   0xc   :  { %p178_p6 = por %p177_p5, %p176_p4 }
   0xe   :  { %p179_p7 = pnand %p178_p6, %p172_p3 }
  0x10   :  { %182 = shalt.err (!%p179_p7)
}
  0x11   :  { %s234_s22 = smov 128   ;;  %s235_s23 = smov 8  }
  0x12   :  { %22 = dma.hbm_to_vmem [thread:$0]  %s307_s0, 256, %s17_s13, [#allocation3], %s234_s22, %s234_s22, %s235_s23  }
  0x13   :  { %s236_s26 = smov [#allocation5]   ;;  %s183_s30 = scalar_lea.hbm %s308_s1, 256 }
  0x14   :  { %s28_s27 = sshll.u32 %s236_s26, 4  ;;  %p184_p8 = scmp.ne.s32.totalorder %s308_s1, %s183_s30  ;;  %s29_s27 = int_to_ptr.vmem [resolvable:$true] %s28_s27 }
  0x15   :  { %p187_p9 = scmp.lt.u32.totalorder %s183_s30, %s308_s1 }
  0x17   :  { %p189_p10 = pnand %p187_p9, %p184_p8 }
  0x19   :  { %192 = shalt.err (!%p189_p10)
}
  0x1a   :  { %s193_s8 = scalar_lea.vmem %s29_s27, 256  ;;  %p198_p12 = scmp.lt.s32.totalorder %s29_s27, %s29_s27 }
  0x1b   :  { %p194_p11 = scmp.ne.s32.totalorder %s29_s27, %s193_s8  ;;  %p199_p13 = scmp.lt.s32.totalorder %s193_s8, %s193_s8 }
  0x1d   :  { %p200_p0 = por %p199_p13, %p198_p12 }
  0x1f   :  { %p201_p1 = pnand %p200_p0, %p194_p11 }
  0x21   :  { %204 = shalt.err (!%p201_p1)
}
  0x22   :  { %s237_s0 = smov 64   ;;  %s238_s9 = smov 4  }
  0x23   :  { %34 = dma.hbm_to_vmem [thread:$0]  %s308_s1, 256, %s29_s27, [#allocation6], %s237_s0, %s237_s0, %s238_s9  }
  0x24   :  { %227 = dma.done.wait [#allocation3], 256  }
  0x25   :  { %228 = vsyncadd [#allocation3], 4294967040 }
  0x26   :  { %229 = dma.done.wait [#allocation6], 256  }
  0x27   :  { %230 = vsyncadd [#allocation6], 4294967040  ;;  %v239_v0 = vmov 0.0   ;;  %vm240_vm0 = vmmov 0   ;;  %v159_v1 = vld [vmem:[#allocation5] sm:$0xff]   ;;  %v160_v2 = vld [vmem:[#allocation5 + $0x8] sm:$0xff]  }
  0x28   :  { %142 = vmatprep.subr.bf16.mxu0 %v239_v0  ;;  %146 = vmatprep.mubr.msk.bf16.mxu0 %vm240_vm0, %v239_v0  ;;  %v44_v3 = vld [vmem:[#allocation2] sm:$0xff]  ;;  %v45_v4 = vld [vmem:[#allocation2 + $0x8] sm:$0xff]  ;;  %vm70_vm1 = vcmask 261120   ;;  %s241_s13 = smov [#allocation7]  }
  0x29   :  { %143 = vmatpush3.bf16.msra.mxu0 %v159_v1  ;;  %v46_v5 = vpack.c.bf16 %v45_v4, %v44_v3  ;;  %v135_v6 = vld [vmem:[%s309_s2] ss:$0 sm:$0xff]  ;;  %s122_s14 = sshll.u32 %s241_s13, 4  ;;  %s123_s14 = int_to_ptr.vmem [resolvable:$true] %s122_s14 }
  0x2a   :  { %144 = vmatprep.subr.bf16.mxu0 %v239_v0  ;;  %s205_s15 = scalar_lea.vmem %s123_s14, 256  ;;  %p210_p3 = scmp.lt.s32.totalorder %s123_s14, %s123_s14 }
  0x2b   :  { %p206_p2 = scmp.ne.s32.totalorder %s123_s14, %s205_s15  ;;  %p211_p4 = scmp.lt.s32.totalorder %s205_s15, %s205_s15 }
  0x2d   :  { %145 = vmatpush3.bf16.msra.mxu0 %v160_v2  ;;  %p212_p5 = por %p211_p4, %p210_p3 }
  0x2f   :  { %p213_p6 = pnand %p212_p5, %p206_p2 }
  0x30   :  { %147 = vmatmul.mubr.msk.bf16.vlgmr.msra.gmra.mrb[0].mxu0 %vm70_vm1, %v46_v5 }
 0x103   :  { %v108_v7 = vpop.f32.mrb[0].mxu0 }
 0x104   :  { %v109_v8 = vadd.f32 %v135_v6, %v108_v7  ;;  %v148_v9 = vpop.f32.mrb[1].mxu0 }
 0x105   :  { %v111_v10 = vpop.f32.mrb[2].mxu0 }
 0x106   :  { %115 = vst [vmem:[#allocation7] sm:$0xff] %v109_v8  ;;  %v112_v11 = vadd.f32 %v135_v6, %v111_v10  ;;  %v149_v12 = vpop.f32.mrb[3].mxu0 }
 0x108   :  { %116 = vst [vmem:[#allocation7 + $0x8] sm:$0xff] %v112_v11 }
 0x109   :  { %216 = shalt.err (!%p213_p6)
}
 0x10a   :  { %s217_s17 = scalar_lea.hbm %s310_s3, 256 }
 0x10b   :  { %p218_p7 = scmp.ne.s32.totalorder %s310_s3, %s217_s17  ;;  %p221_p8 = scmp.lt.u32.totalorder %s217_s17, %s310_s3 }
 0x10d   :  { %p223_p9 = pnand %p221_p8, %p218_p7 }
 0x10f   :  { %226 = shalt.err (!%p223_p9)
}
 0x110   :  { %128 = dma.vmem_to_hbm [thread:$0]  %s123_s14, 256, %s310_s3, [#allocation4], %s234_s22, %s234_s22, %s235_s23  }
 0x111   :  { %231 = dma.done.wait [#allocation4], 256  }
 0x112   :  { %232 = vsyncadd [#allocation4], 4294967040 }
 0x113   :  { %132 = vsyncpa [#allocation3], 1 }
 0x114   :  { %133 = vsyncpa [#allocation6], 1 }
 0x115   :  { %134 = vsyncpa [#allocation4], 1 }

</bundles_post_ra>
